<compile_context>
chip_gen: v7x
topology: tpu7x:2x2x1
jax: 0.10.0
libtpu: 0.0.40
codegen_flags: <defaults>
</compile_context>

<pallas_src>
import functools

import jax
import jax.numpy as jnp
from jax.experimental import pallas as pl
from jax.experimental.pallas import tpu as pltpu


# ---------------------------------------------------------------------------
# Fused kernel: conv1 -> ReLU -> conv2 -> ReLU for the WHOLE (small) batch.
# ---------------------------------------------------------------------------
def _double_conv_kernel(x_ref, w1_ref, b1_ref, w2_ref, b2_ref, o_ref,
                        rhs1_ref, rhs2_ref, *, k, W, Lmid, Lout):
    # x_ref   : (N, Cin, L)      flattened row-major NCHW input, original dtype
    # w1_ref  : (C1, k*k*Cin)    tap-folded weights, column = (dy*k + dx)*Cin + ci
    # b1_ref  : (C1, 1)          f32
    # w2_ref  : (C2, k*k*C1)
    # b2_ref  : (C2, 1)          f32
    # o_ref   : (C2, N*Lout)     batch folded into lanes; full-width rows per image
    #                            (in-row columns >= Wo2 are junk, dropped by caller)
    # rhs1_ref: (k*k*Cin, N*Lmid) VMEM im2col stack for conv1 (compute dtype)
    # rhs2_ref: (k*k*C1,  N*Lout) VMEM im2col stack for conv2 (compute dtype)
    n_img, cin, L = x_ref.shape
    c1 = w1_ref.shape[0]
    cdt = w1_ref.dtype                                    # MXU compute dtype
    shifts = [dy * W + dx for dy in range(k) for dx in range(k)]

    # Zero-init conv1's stack once: columns past each tap's valid input length stay
    # zero.  (Those columns only ever feed junk output columns — see wrapper asserts —
    # but zeros keep the invariant simple and NaN-free.)
    rhs1_ref[...] = jnp.zeros_like(rhs1_ref)

    # Load each image's plane once and cast in VMEM (no wrapper HBM pass).
    xs = [x_ref[n].astype(cdt) for n in range(n_img)]     # each (Cin, L)

    # ---- conv1: build the stacked RHS (rows = (tap, ci), cols = (image, pixel)) ----
    for t, s in enumerate(shifts):
        vlen = min(Lmid, L - s)                           # static per tap
        for n in range(n_img):
            rhs1_ref[t * cin:(t + 1) * cin, n * Lmid:n * Lmid + vlen] = xs[n][:, s:s + vlen]

    # ONE MXU dot for conv1 (+ bias + ReLU), f32 accumulation.
    mid = jnp.dot(w1_ref[...], rhs1_ref[...], preferred_element_type=jnp.float32)
    mid = jnp.maximum(mid + b1_ref[...], 0.0)             # (C1, N*Lmid), f32

    # ---- conv2 on the VMEM-resident intermediate ----
    # Per-image mid segments have length Lmid = max_shift + Lout, so every shifted
    # window stays inside its own image's segment (wrapper asserts this invariant).
    midc = mid.astype(cdt)                                # bf16 rounding is a deliberate
    for t, s in enumerate(shifts):                        # accuracy/perf trade-off
        for n in range(n_img):
            rhs2_ref[t * c1:(t + 1) * c1, n * Lout:(n + 1) * Lout] = (
                midc[:, n * Lmid + s:n * Lmid + s + Lout])

    out = jnp.dot(w2_ref[...], rhs2_ref[...], preferred_element_type=jnp.float32)
    # Single lane-dense store: (C2, N*Lout) with N*Lout a multiple of 128 here.
    o_ref[...] = jnp.maximum(out + b2_ref[...], 0.0).astype(o_ref.dtype)


# ---------------------------------------------------------------------------
# Wrapper
# ---------------------------------------------------------------------------
def double_conv_forward(params, x_nchw):
    """DoubleConv.forward. x_nchw: (N, Cin, H, W) -> (N, C2, H-2(k-1), W-2(k-1))."""
    w1, b1, w2, b2 = params["w1"], params["b1"], params["w2"], params["b2"]
    N, Cin, H, W = x_nchw.shape
    c1, c2 = w1.shape[0], w2.shape[0]
    kk = w1.shape[1] // Cin
    k = int(round(kk ** 0.5))
    assert k * k == kk and w1.shape[1] == kk * Cin and w2.shape[1] == kk * c1
    assert H >= 2 * k - 1 and W >= 2 * k - 1

    Ho1, Wo1 = H - (k - 1), W - (k - 1)
    Ho2, Wo2 = H - 2 * (k - 1), W - 2 * (k - 1)
    L = H * W
    Lout = Ho2 * W                        # full-width rows (junk cols dropped below)
    Lmid = Ho1 * W + (k - 1)              # per-image conv1 columns computed
    max_shift = (k - 1) * W + (k - 1)
    # Tiling invariants (keep these if you ever change the tiling!):
    #  - every conv2 window of `mid` stays inside its own image's Lmid segment;
    #  - every *valid* mid column reads only in-bounds input lanes (junk mid columns
    #    read the zero tail of the scratch and feed only junk output columns).
    assert Lmid >= max_shift + Lout
    assert (Ho1 - 1) * W + (Wo1 - 1) + max_shift <= L - 1

    cdt = w1.dtype                        # compute dtype baked into prepared params
    x_flat = x_nchw.reshape(N, Cin, L)    # metadata-only; cast happens in-kernel

    kern = functools.partial(_double_conv_kernel, k=k, W=W, Lmid=Lmid, Lout=Lout)

    out_flat = pl.pallas_call(
        kern,
        out_shape=jax.ShapeDtypeStruct((c2, N * Lout), cdt),
        in_specs=[pl.BlockSpec(memory_space=pltpu.MemorySpace.VMEM)] * 5,
        out_specs=pl.BlockSpec(memory_space=pltpu.MemorySpace.VMEM),
        scratch_shapes=[pltpu.VMEM((kk * Cin, N * Lmid), cdt),
                        pltpu.VMEM((kk * c1, N * Lout), cdt)],
    )(x_flat, w1, b1, w2, b2)

    # (C2, N*Lout) -> NCHW; rows are full-width, drop the junk columns here.
    return out_flat.reshape(c2, N, Ho2, W).transpose(1, 0, 2, 3)[:, :, :, :Wo2]


# ---------------------------------------------------------------------------
# Parameter init (PyTorch semantics) + one-time kernel-layout preparation
# ---------------------------------------------------------------------------
def init_double_conv_params(key, in_ch, out_ch, k=3):
    """Matches DoubleConv.__init__ + Net.weights_init: kaiming_normal_(fan_out, relu)
    conv weights; PyTorch-default U(-1/sqrt(fan_in), 1/sqrt(fan_in)) conv biases."""
    k1, k2, k3, k4 = jax.random.split(key, 4)
    std = (2.0 / (out_ch * k * k)) ** 0.5                 # fan_out = out_ch * k * k
    w1 = std * jax.random.normal(k1, (out_ch, in_ch, k, k), jnp.float32)
    w2 = std * jax.random.normal(k2, (out_ch, out_ch, k, k), jnp.float32)
    bound1 = 1.0 / (in_ch * k * k) ** 0.5
    bound2 = 1.0 / (out_ch * k * k) ** 0.5
    b1 = jax.random.uniform(k3, (out_ch,), jnp.float32, -bound1, bound1)
    b2 = jax.random.uniform(k4, (out_ch,), jnp.float32, -bound2, bound2)
    return dict(w1=w1, b1=b1, w2=w2, b2=b2)


def prepare_double_conv_params(raw, compute_dtype=jnp.bfloat16):
    """One-time re-layout (hoisted out of the forward path):
    (Cout, Cin, k, k) -> tap-folded (Cout, k*k*Cin), column = (dy*k+dx)*Cin + ci
    (matches the kernel's stacked-RHS row order); biases -> (Cout, 1) f32."""
    def fold(w):
        co, ci, kh, kw = w.shape
        return (jnp.transpose(w, (0, 2, 3, 1))
                .reshape(co, kh * kw * ci).astype(compute_dtype))
    return dict(
        w1=fold(raw["w1"]), b1=raw["b1"].reshape(-1, 1).astype(jnp.float32),
        w2=fold(raw["w2"]), b2=raw["b2"].reshape(-1, 1).astype(jnp.float32))


# ---------------------------------------------------------------------------
# Pure-JAX reference (lax.conv, f32) for correctness checking
# ---------------------------------------------------------------------------
def _reference_double_conv(raw, x_nchw):
    def conv(x, w, b):
        y = jax.lax.conv_general_dilated(
            x, w, window_strides=(1, 1), padding="VALID",
            dimension_numbers=("NCHW", "OIHW", "NCHW"))
        return jnp.maximum(y + b.reshape(1, -1, 1, 1), 0.0)
    return conv(conv(x_nchw, raw["w1"], raw["b1"]), raw["w2"], raw["b2"])


if __name__ == "__main__":
    key = jax.random.PRNGKey(0)
    k_x, k_p = jax.random.split(key)

    N, C_in, C_out, H, W = 2, 4, 8, 16, 16
    x = jax.random.normal(k_x, (N, C_in, H, W), jnp.float32)
    raw = init_double_conv_params(k_p, C_in, C_out, k=3)
    ref = _reference_double_conv(raw, x)

    fwd = jax.jit(double_conv_forward)

    # f32 path: PyTorch-f32 semantics (accumulation order differs -> not bitwise).
    p_f32 = prepare_double_conv_params(raw, jnp.float32)
    out_f32 = jax.block_until_ready(fwd(p_f32, x))
    assert out_f32.shape == (N, C_out, H - 4, W - 4), out_f32.shape
    assert jnp.allclose(out_f32, ref, atol=1e-3, rtol=1e-3), (
        float(jnp.max(jnp.abs(out_f32 - ref))))

    # bf16 path (performance default): bf16 operands + bf16 intermediate, f32 accum,
    # bf16 output (deliberate accuracy/perf trade-off vs PyTorch f32).
    p_bf16 = prepare_double_conv_params(raw, jnp.bfloat16)
    out_bf16 = jax.block_until_ready(fwd(p_bf16, x))
    assert out_bf16.shape == (N, C_out, H - 4, W - 4), out_bf16.shape
    assert jnp.allclose(out_bf16.astype(jnp.float32), ref, atol=7e-2, rtol=7e-2), (
        float(jnp.max(jnp.abs(out_bf16.astype(jnp.float32) - ref))))

    print("KERNEL_OK")
</pallas_src>

<mosaic_0001>
module attributes {stable_mosaic.version = 11 : i64} {
  func.func @_double_conv_kernel(%arg0: memref<2x4x256xf32, #tpu.memory_space<vmem>>, %arg1: memref<8x36xf32, #tpu.memory_space<vmem>>, %arg2: memref<8x1xf32, #tpu.memory_space<vmem>>, %arg3: memref<8x72xf32, #tpu.memory_space<vmem>>, %arg4: memref<8x1xf32, #tpu.memory_space<vmem>>, %arg5: memref<8x384xf32, #tpu.memory_space<vmem>>, %arg6: memref<36x452xf32, #tpu.memory_space<vmem>>, %arg7: memref<72x384xf32, #tpu.memory_space<vmem>>) attributes {dimension_semantics = [], scalar_prefetch = 0 : i64, scratch_operands = 2 : i64, tpu.core_type = #tpu.core_type<tc>} {
    %cst = arith.constant 0.000000e+00 : f32
    %0 = vector.broadcast %cst : f32 to vector<36x452xf32>
    %c0 = arith.constant 0 : index
    %c0_0 = arith.constant 0 : index
    %1 = vector.load %arg6[%c0, %c0_0] : memref<36x452xf32, #tpu.memory_space<vmem>>, vector<36x452xf32>
    tpu.vector_store %arg6[%c0, %c0_0], %0 {strides = array<i32>} : memref<36x452xf32, #tpu.memory_space<vmem>>, vector<36x452xf32>,
    %c0_1 = arith.constant 0 : index
    %c0_2 = arith.constant 0 : index
    %c0_3 = arith.constant 0 : index
    %2 = vector.load %arg0[%c0_1, %c0_2, %c0_3] : memref<2x4x256xf32, #tpu.memory_space<vmem>>, vector<1x4x256xf32>
    %3 = vector.shape_cast %2 : vector<1x4x256xf32> to vector<4x256xf32>
    %c1 = arith.constant 1 : index
    %c0_4 = arith.constant 0 : index
    %c0_5 = arith.constant 0 : index
    %4 = vector.load %arg0[%c1, %c0_4, %c0_5] : memref<2x4x256xf32, #tpu.memory_space<vmem>>, vector<1x4x256xf32>
    %5 = vector.shape_cast %4 : vector<1x4x256xf32> to vector<4x256xf32>
    %6 = vector.extract_strided_slice %3 {offsets = [0, 0], sizes = [4, 226], strides = [1, 1]} : vector<4x256xf32> to vector<4x226xf32>
    %c0_6 = arith.constant 0 : index
    %c0_7 = arith.constant 0 : index
    %7 = vector.load %arg6[%c0_6, %c0_7] : memref<36x452xf32, #tpu.memory_space<vmem>>, vector<4x226xf32>
    tpu.vector_store %arg6[%c0_6, %c0_7], %6 {strides = array<i32>} : memref<36x452xf32, #tpu.memory_space<vmem>>, vector<4x226xf32>,
    %8 = vector.extract_strided_slice %5 {offsets = [0, 0], sizes = [4, 226], strides = [1, 1]} : vector<4x256xf32> to vector<4x226xf32>
    %c0_8 = arith.constant 0 : index
    %c226 = arith.constant 226 : index
    %9 = vector.load %arg6[%c0_8, %c226] : memref<36x452xf32, #tpu.memory_space<vmem>>, vector<4x226xf32>
    tpu.vector_store %arg6[%c0_8, %c226], %8 {strides = array<i32>} : memref<36x452xf32, #tpu.memory_space<vmem>>, vector<4x226xf32>,
    %10 = vector.extract_strided_slice %3 {offsets = [0, 1], sizes = [4, 226], strides = [1, 1]} : vector<4x256xf32> to vector<4x226xf32>
    %c4 = arith.constant 4 : index
    %c0_9 = arith.constant 0 : index
    %11 = vector.load %arg6[%c4, %c0_9] : memref<36x452xf32, #tpu.memory_space<vmem>>, vector<4x226xf32>
    tpu.vector_store %arg6[%c4, %c0_9], %10 {strides = array<i32>} : memref<36x452xf32, #tpu.memory_space<vmem>>, vector<4x226xf32>,
    %12 = vector.extract_strided_slice %5 {offsets = [0, 1], sizes = [4, 226], strides = [1, 1]} : vector<4x256xf32> to vector<4x226xf32>
    %c4_10 = arith.constant 4 : index
    %c226_11 = arith.constant 226 : index
    %13 = vector.load %arg6[%c4_10, %c226_11] : memref<36x452xf32, #tpu.memory_space<vmem>>, vector<4x226xf32>
    tpu.vector_store %arg6[%c4_10, %c226_11], %12 {strides = array<i32>} : memref<36x452xf32, #tpu.memory_space<vmem>>, vector<4x226xf32>,
    %14 = vector.extract_strided_slice %3 {offsets = [0, 2], sizes = [4, 226], strides = [1, 1]} : vector<4x256xf32> to vector<4x226xf32>
    %c8 = arith.constant 8 : index
    %c0_12 = arith.constant 0 : index
    %15 = vector.load %arg6[%c8, %c0_12] : memref<36x452xf32, #tpu.memory_space<vmem>>, vector<4x226xf32>
    tpu.vector_store %arg6[%c8, %c0_12], %14 {strides = array<i32>} : memref<36x452xf32, #tpu.memory_space<vmem>>, vector<4x226xf32>,
    %16 = vector.extract_strided_slice %5 {offsets = [0, 2], sizes = [4, 226], strides = [1, 1]} : vector<4x256xf32> to vector<4x226xf32>
    %c8_13 = arith.constant 8 : index
    %c226_14 = arith.constant 226 : index
    %17 = vector.load %arg6[%c8_13, %c226_14] : memref<36x452xf32, #tpu.memory_space<vmem>>, vector<4x226xf32>
    tpu.vector_store %arg6[%c8_13, %c226_14], %16 {strides = array<i32>} : memref<36x452xf32, #tpu.memory_space<vmem>>, vector<4x226xf32>,
    %18 = vector.extract_strided_slice %3 {offsets = [0, 16], sizes = [4, 226], strides = [1, 1]} : vector<4x256xf32> to vector<4x226xf32>
    %c12 = arith.constant 12 : index
    %c0_15 = arith.constant 0 : index
    %19 = vector.load %arg6[%c12, %c0_15] : memref<36x452xf32, #tpu.memory_space<vmem>>, vector<4x226xf32>
    tpu.vector_store %arg6[%c12, %c0_15], %18 {strides = array<i32>} : memref<36x452xf32, #tpu.memory_space<vmem>>, vector<4x226xf32>,
    %20 = vector.extract_strided_slice %5 {offsets = [0, 16], sizes = [4, 226], strides = [1, 1]} : vector<4x256xf32> to vector<4x226xf32>
    %c12_16 = arith.constant 12 : index
    %c226_17 = arith.constant 226 : index
    %21 = vector.load %arg6[%c12_16, %c226_17] : memref<36x452xf32, #tpu.memory_space<vmem>>, vector<4x226xf32>
    tpu.vector_store %arg6[%c12_16, %c226_17], %20 {strides = array<i32>} : memref<36x452xf32, #tpu.memory_space<vmem>>, vector<4x226xf32>,
    %22 = vector.extract_strided_slice %3 {offsets = [0, 17], sizes = [4, 226], strides = [1, 1]} : vector<4x256xf32> to vector<4x226xf32>
    %c16 = arith.constant 16 : index
    %c0_18 = arith.constant 0 : index
    %23 = vector.load %arg6[%c16, %c0_18] : memref<36x452xf32, #tpu.memory_space<vmem>>, vector<4x226xf32>
    tpu.vector_store %arg6[%c16, %c0_18], %22 {strides = array<i32>} : memref<36x452xf32, #tpu.memory_space<vmem>>, vector<4x226xf32>,
    %24 = vector.extract_strided_slice %5 {offsets = [0, 17], sizes = [4, 226], strides = [1, 1]} : vector<4x256xf32> to vector<4x226xf32>
    %c16_19 = arith.constant 16 : index
    %c226_20 = arith.constant 226 : index
    %25 = vector.load %arg6[%c16_19, %c226_20] : memref<36x452xf32, #tpu.memory_space<vmem>>, vector<4x226xf32>
    tpu.vector_store %arg6[%c16_19, %c226_20], %24 {strides = array<i32>} : memref<36x452xf32, #tpu.memory_space<vmem>>, vector<4x226xf32>,
    %26 = vector.extract_strided_slice %3 {offsets = [0, 18], sizes = [4, 226], strides = [1, 1]} : vector<4x256xf32> to vector<4x226xf32>
    %c20 = arith.constant 20 : index
    %c0_21 = arith.constant 0 : index
    %27 = vector.load %arg6[%c20, %c0_21] : memref<36x452xf32, #tpu.memory_space<vmem>>, vector<4x226xf32>
    tpu.vector_store %arg6[%c20, %c0_21], %26 {strides = array<i32>} : memref<36x452xf32, #tpu.memory_space<vmem>>, vector<4x226xf32>,
    %28 = vector.extract_strided_slice %5 {offsets = [0, 18], sizes = [4, 226], strides = [1, 1]} : vector<4x256xf32> to vector<4x226xf32>
    %c20_22 = arith.constant 20 : index
    %c226_23 = arith.constant 226 : index
    %29 = vector.load %arg6[%c20_22, %c226_23] : memref<36x452xf32, #tpu.memory_space<vmem>>, vector<4x226xf32>
    tpu.vector_store %arg6[%c20_22, %c226_23], %28 {strides = array<i32>} : memref<36x452xf32, #tpu.memory_space<vmem>>, vector<4x226xf32>,
    %30 = vector.extract_strided_slice %3 {offsets = [0, 32], sizes = [4, 224], strides = [1, 1]} : vector<4x256xf32> to vector<4x224xf32>
    %c24 = arith.constant 24 : index
    %c0_24 = arith.constant 0 : index
    %31 = vector.load %arg6[%c24, %c0_24] : memref<36x452xf32, #tpu.memory_space<vmem>>, vector<4x224xf32>
    tpu.vector_store %arg6[%c24, %c0_24], %30 {strides = array<i32>} : memref<36x452xf32, #tpu.memory_space<vmem>>, vector<4x224xf32>,
    %32 = vector.extract_strided_slice %5 {offsets = [0, 32], sizes = [4, 224], strides = [1, 1]} : vector<4x256xf32> to vector<4x224xf32>
    %c24_25 = arith.constant 24 : index
    %c226_26 = arith.constant 226 : index
    %33 = vector.load %arg6[%c24_25, %c226_26] : memref<36x452xf32, #tpu.memory_space<vmem>>, vector<4x224xf32>
    tpu.vector_store %arg6[%c24_25, %c226_26], %32 {strides = array<i32>} : memref<36x452xf32, #tpu.memory_space<vmem>>, vector<4x224xf32>,
    %34 = vector.extract_strided_slice %3 {offsets = [0, 33], sizes = [4, 223], strides = [1, 1]} : vector<4x256xf32> to vector<4x223xf32>
    %c28 = arith.constant 28 : index
    %c0_27 = arith.constant 0 : index
    %35 = vector.load %arg6[%c28, %c0_27] : memref<36x452xf32, #tpu.memory_space<vmem>>, vector<4x223xf32>
    tpu.vector_store %arg6[%c28, %c0_27], %34 {strides = array<i32>} : memref<36x452xf32, #tpu.memory_space<vmem>>, vector<4x223xf32>,
    %36 = vector.extract_strided_slice %5 {offsets = [0, 33], sizes = [4, 223], strides = [1, 1]} : vector<4x256xf32> to vector<4x223xf32>
    %c28_28 = arith.constant 28 : index
    %c226_29 = arith.constant 226 : index
    %37 = vector.load %arg6[%c28_28, %c226_29] : memref<36x452xf32, #tpu.memory_space<vmem>>, vector<4x223xf32>
    tpu.vector_store %arg6[%c28_28, %c226_29], %36 {strides = array<i32>} : memref<36x452xf32, #tpu.memory_space<vmem>>, vector<4x223xf32>,
    %38 = vector.extract_strided_slice %3 {offsets = [0, 34], sizes = [4, 222], strides = [1, 1]} : vector<4x256xf32> to vector<4x222xf32>
    %c32 = arith.constant 32 : index
    %c0_30 = arith.constant 0 : index
    %39 = vector.load %arg6[%c32, %c0_30] : memref<36x452xf32, #tpu.memory_space<vmem>>, vector<4x222xf32>
    tpu.vector_store %arg6[%c32, %c0_30], %38 {strides = array<i32>} : memref<36x452xf32, #tpu.memory_space<vmem>>, vector<4x222xf32>,
    %40 = vector.extract_strided_slice %5 {offsets = [0, 34], sizes = [4, 222], strides = [1, 1]} : vector<4x256xf32> to vector<4x222xf32>
    %c32_31 = arith.constant 32 : index
    %c226_32 = arith.constant 226 : index
    %41 = vector.load %arg6[%c32_31, %c226_32] : memref<36x452xf32, #tpu.memory_space<vmem>>, vector<4x222xf32>
    tpu.vector_store %arg6[%c32_31, %c226_32], %40 {strides = array<i32>} : memref<36x452xf32, #tpu.memory_space<vmem>>, vector<4x222xf32>,
    %c0_33 = arith.constant 0 : index
    %c0_34 = arith.constant 0 : index
    %42 = vector.load %arg1[%c0_33, %c0_34] : memref<8x36xf32, #tpu.memory_space<vmem>>, vector<8x36xf32>
    %c0_35 = arith.constant 0 : index
    %c0_36 = arith.constant 0 : index
    %43 = vector.load %arg6[%c0_35, %c0_36] : memref<36x452xf32, #tpu.memory_space<vmem>>, vector<36x452xf32>
    %cst_37 = arith.constant dense<0.000000e+00> : vector<8x452xf32>
    %44 = tpu.matmul %42, %43, %cst_37 {dimension_numbers = #tpu.dot_dimension_numbers<[1], [0], [0], [1], [0, 0, 1, 1], [], []>} : vector<8x36xf32>, vector<36x452xf32>, vector<8x452xf32> -> vector<8x452xf32>
    %c0_38 = arith.constant 0 : index
    %c0_39 = arith.constant 0 : index
    %45 = vector.load %arg2[%c0_38, %c0_39] : memref<8x1xf32, #tpu.memory_space<vmem>>, vector<8x1xf32>
    %46 = vector.broadcast %45 : vector<8x1xf32> to vector<8x452xf32>
    %47 = arith.addf %44, %46 : vector<8x452xf32>
    %cst_40 = arith.constant 0.000000e+00 : f32
    %48 = vector.broadcast %cst_40 : f32 to vector<8x452xf32>
    %49 = arith.maximumf %47, %48 : vector<8x452xf32>
    %50 = vector.extract_strided_slice %49 {offsets = [0, 0], sizes = [8, 192], strides = [1, 1]} : vector<8x452xf32> to vector<8x192xf32>
    %c0_41 = arith.constant 0 : index
    %c0_42 = arith.constant 0 : index
    %51 = vector.load %arg7[%c0_41, %c0_42] : memref<72x384xf32, #tpu.memory_space<vmem>>, vector<8x192xf32>
    tpu.vector_store %arg7[%c0_41, %c0_42], %50 {strides = array<i32>} : memref<72x384xf32, #tpu.memory_space<vmem>>, vector<8x192xf32>,
    %52 = vector.extract_strided_slice %49 {offsets = [0, 226], sizes = [8, 192], strides = [1, 1]} : vector<8x452xf32> to vector<8x192xf32>
    %c0_43 = arith.constant 0 : index
    %c192 = arith.constant 192 : index
    %53 = vector.load %arg7[%c0_43, %c192] : memref<72x384xf32, #tpu.memory_space<vmem>>, vector<8x192xf32>
    tpu.vector_store %arg7[%c0_43, %c192], %52 {strides = array<i32>} : memref<72x384xf32, #tpu.memory_space<vmem>>, vector<8x192xf32>,
    %54 = vector.extract_strided_slice %49 {offsets = [0, 1], sizes = [8, 192], strides = [1, 1]} : vector<8x452xf32> to vector<8x192xf32>
    %c8_44 = arith.constant 8 : index
    %c0_45 = arith.constant 0 : index
    %55 = vector.load %arg7[%c8_44, %c0_45] : memref<72x384xf32, #tpu.memory_space<vmem>>, vector<8x192xf32>
    tpu.vector_store %arg7[%c8_44, %c0_45], %54 {strides = array<i32>} : memref<72x384xf32, #tpu.memory_space<vmem>>, vector<8x192xf32>,
    %56 = vector.extract_strided_slice %49 {offsets = [0, 227], sizes = [8, 192], strides = [1, 1]} : vector<8x452xf32> to vector<8x192xf32>
    %c8_46 = arith.constant 8 : index
    %c192_47 = arith.constant 192 : index
    %57 = vector.load %arg7[%c8_46, %c192_47] : memref<72x384xf32, #tpu.memory_space<vmem>>, vector<8x192xf32>
    tpu.vector_store %arg7[%c8_46, %c192_47], %56 {strides = array<i32>} : memref<72x384xf32, #tpu.memory_space<vmem>>, vector<8x192xf32>,
    %58 = vector.extract_strided_slice %49 {offsets = [0, 2], sizes = [8, 192], strides = [1, 1]} : vector<8x452xf32> to vector<8x192xf32>
    %c16_48 = arith.constant 16 : index
    %c0_49 = arith.constant 0 : index
    %59 = vector.load %arg7[%c16_48, %c0_49] : memref<72x384xf32, #tpu.memory_space<vmem>>, vector<8x192xf32>
    tpu.vector_store %arg7[%c16_48, %c0_49], %58 {strides = array<i32>} : memref<72x384xf32, #tpu.memory_space<vmem>>, vector<8x192xf32>,
    %60 = vector.extract_strided_slice %49 {offsets = [0, 228], sizes = [8, 192], strides = [1, 1]} : vector<8x452xf32> to vector<8x192xf32>
    %c16_50 = arith.constant 16 : index
    %c192_51 = arith.constant 192 : index
    %61 = vector.load %arg7[%c16_50, %c192_51] : memref<72x384xf32, #tpu.memory_space<vmem>>, vector<8x192xf32>
    tpu.vector_store %arg7[%c16_50, %c192_51], %60 {strides = array<i32>} : memref<72x384xf32, #tpu.memory_space<vmem>>, vector<8x192xf32>,
    %62 = vector.extract_strided_slice %49 {offsets = [0, 16], sizes = [8, 192], strides = [1, 1]} : vector<8x452xf32> to vector<8x192xf32>
    %c24_52 = arith.constant 24 : index
    %c0_53 = arith.constant 0 : index
    %63 = vector.load %arg7[%c24_52, %c0_53] : memref<72x384xf32, #tpu.memory_space<vmem>>, vector<8x192xf32>
    tpu.vector_store %arg7[%c24_52, %c0_53], %62 {strides = array<i32>} : memref<72x384xf32, #tpu.memory_space<vmem>>, vector<8x192xf32>,
    %64 = vector.extract_strided_slice %49 {offsets = [0, 242], sizes = [8, 192], strides = [1, 1]} : vector<8x452xf32> to vector<8x192xf32>
    %c24_54 = arith.constant 24 : index
    %c192_55 = arith.constant 192 : index
    %65 = vector.load %arg7[%c24_54, %c192_55] : memref<72x384xf32, #tpu.memory_space<vmem>>, vector<8x192xf32>
    tpu.vector_store %arg7[%c24_54, %c192_55], %64 {strides = array<i32>} : memref<72x384xf32, #tpu.memory_space<vmem>>, vector<8x192xf32>,
    %66 = vector.extract_strided_slice %49 {offsets = [0, 17], sizes = [8, 192], strides = [1, 1]} : vector<8x452xf32> to vector<8x192xf32>
    %c32_56 = arith.constant 32 : index
    %c0_57 = arith.constant 0 : index
    %67 = vector.load %arg7[%c32_56, %c0_57] : memref<72x384xf32, #tpu.memory_space<vmem>>, vector<8x192xf32>
    tpu.vector_store %arg7[%c32_56, %c0_57], %66 {strides = array<i32>} : memref<72x384xf32, #tpu.memory_space<vmem>>, vector<8x192xf32>,
    %68 = vector.extract_strided_slice %49 {offsets = [0, 243], sizes = [8, 192], strides = [1, 1]} : vector<8x452xf32> to vector<8x192xf32>
    %c32_58 = arith.constant 32 : index
    %c192_59 = arith.constant 192 : index
    %69 = vector.load %arg7[%c32_58, %c192_59] : memref<72x384xf32, #tpu.memory_space<vmem>>, vector<8x192xf32>
    tpu.vector_store %arg7[%c32_58, %c192_59], %68 {strides = array<i32>} : memref<72x384xf32, #tpu.memory_space<vmem>>, vector<8x192xf32>,
    %70 = vector.extract_strided_slice %49 {offsets = [0, 18], sizes = [8, 192], strides = [1, 1]} : vector<8x452xf32> to vector<8x192xf32>
    %c40 = arith.constant 40 : index
    %c0_60 = arith.constant 0 : index
    %71 = vector.load %arg7[%c40, %c0_60] : memref<72x384xf32, #tpu.memory_space<vmem>>, vector<8x192xf32>
    tpu.vector_store %arg7[%c40, %c0_60], %70 {strides = array<i32>} : memref<72x384xf32, #tpu.memory_space<vmem>>, vector<8x192xf32>,
    %72 = vector.extract_strided_slice %49 {offsets = [0, 244], sizes = [8, 192], strides = [1, 1]} : vector<8x452xf32> to vector<8x192xf32>
    %c40_61 = arith.constant 40 : index
    %c192_62 = arith.constant 192 : index
    %73 = vector.load %arg7[%c40_61, %c192_62] : memref<72x384xf32, #tpu.memory_space<vmem>>, vector<8x192xf32>
    tpu.vector_store %arg7[%c40_61, %c192_62], %72 {strides = array<i32>} : memref<72x384xf32, #tpu.memory_space<vmem>>, vector<8x192xf32>,
    %74 = vector.extract_strided_slice %49 {offsets = [0, 32], sizes = [8, 192], strides = [1, 1]} : vector<8x452xf32> to vector<8x192xf32>
    %c48 = arith.constant 48 : index
    %c0_63 = arith.constant 0 : index
    %75 = vector.load %arg7[%c48, %c0_63] : memref<72x384xf32, #tpu.memory_space<vmem>>, vector<8x192xf32>
    tpu.vector_store %arg7[%c48, %c0_63], %74 {strides = array<i32>} : memref<72x384xf32, #tpu.memory_space<vmem>>, vector<8x192xf32>,
    %76 = vector.extract_strided_slice %49 {offsets = [0, 258], sizes = [8, 192], strides = [1, 1]} : vector<8x452xf32> to vector<8x192xf32>
    %c48_64 = arith.constant 48 : index
    %c192_65 = arith.constant 192 : index
    %77 = vector.load %arg7[%c48_64, %c192_65] : memref<72x384xf32, #tpu.memory_space<vmem>>, vector<8x192xf32>
    tpu.vector_store %arg7[%c48_64, %c192_65], %76 {strides = array<i32>} : memref<72x384xf32, #tpu.memory_space<vmem>>, vector<8x192xf32>,
    %78 = vector.extract_strided_slice %49 {offsets = [0, 33], sizes = [8, 192], strides = [1, 1]} : vector<8x452xf32> to vector<8x192xf32>
    %c56 = arith.constant 56 : index
    %c0_66 = arith.constant 0 : index
    %79 = vector.load %arg7[%c56, %c0_66] : memref<72x384xf32, #tpu.memory_space<vmem>>, vector<8x192xf32>
    tpu.vector_store %arg7[%c56, %c0_66], %78 {strides = array<i32>} : memref<72x384xf32, #tpu.memory_space<vmem>>, vector<8x192xf32>,
    %80 = vector.extract_strided_slice %49 {offsets = [0, 259], sizes = [8, 192], strides = [1, 1]} : vector<8x452xf32> to vector<8x192xf32>
    %c56_67 = arith.constant 56 : index
    %c192_68 = arith.constant 192 : index
    %81 = vector.load %arg7[%c56_67, %c192_68] : memref<72x384xf32, #tpu.memory_space<vmem>>, vector<8x192xf32>
    tpu.vector_store %arg7[%c56_67, %c192_68], %80 {strides = array<i32>} : memref<72x384xf32, #tpu.memory_space<vmem>>, vector<8x192xf32>,
    %82 = vector.extract_strided_slice %49 {offsets = [0, 34], sizes = [8, 192], strides = [1, 1]} : vector<8x452xf32> to vector<8x192xf32>
    %c64 = arith.constant 64 : index
    %c0_69 = arith.constant 0 : index
    %83 = vector.load %arg7[%c64, %c0_69] : memref<72x384xf32, #tpu.memory_space<vmem>>, vector<8x192xf32>
    tpu.vector_store %arg7[%c64, %c0_69], %82 {strides = array<i32>} : memref<72x384xf32, #tpu.memory_space<vmem>>, vector<8x192xf32>,
    %84 = vector.extract_strided_slice %49 {offsets = [0, 260], sizes = [8, 192], strides = [1, 1]} : vector<8x452xf32> to vector<8x192xf32>
    %c64_70 = arith.constant 64 : index
    %c192_71 = arith.constant 192 : index
    %85 = vector.load %arg7[%c64_70, %c192_71] : memref<72x384xf32, #tpu.memory_space<vmem>>, vector<8x192xf32>
    tpu.vector_store %arg7[%c64_70, %c192_71], %84 {strides = array<i32>} : memref<72x384xf32, #tpu.memory_space<vmem>>, vector<8x192xf32>,
    %c0_72 = arith.constant 0 : index
    %c0_73 = arith.constant 0 : index
    %86 = vector.load %arg3[%c0_72, %c0_73] : memref<8x72xf32, #tpu.memory_space<vmem>>, vector<8x72xf32>
    %c0_74 = arith.constant 0 : index
    %c0_75 = arith.constant 0 : index
    %87 = vector.load %arg7[%c0_74, %c0_75] : memref<72x384xf32, #tpu.memory_space<vmem>>, vector<72x384xf32>
    %cst_76 = arith.constant dense<0.000000e+00> : vector<8x384xf32>
    %88 = tpu.matmul %86, %87, %cst_76 {dimension_numbers = #tpu.dot_dimension_numbers<[1], [0], [0], [1], [0, 0, 1, 1], [], []>} : vector<8x72xf32>, vector<72x384xf32>, vector<8x384xf32> -> vector<8x384xf32>
    %c0_77 = arith.constant 0 : index
    %c0_78 = arith.constant 0 : index
    %89 = vector.load %arg4[%c0_77, %c0_78] : memref<8x1xf32, #tpu.memory_space<vmem>>, vector<8x1xf32>
    %90 = vector.broadcast %89 : vector<8x1xf32> to vector<8x384xf32>
    %91 = arith.addf %88, %90 : vector<8x384xf32>
    %cst_79 = arith.constant 0.000000e+00 : f32
    %92 = vector.broadcast %cst_79 : f32 to vector<8x384xf32>
    %93 = arith.maximumf %91, %92 : vector<8x384xf32>
    %c0_80 = arith.constant 0 : index
    %c0_81 = arith.constant 0 : index
    %94 = vector.load %arg5[%c0_80, %c0_81] : memref<8x384xf32, #tpu.memory_space<vmem>>, vector<8x384xf32>
    tpu.vector_store %arg5[%c0_80, %c0_81], %93 {strides = array<i32>} : memref<8x384xf32, #tpu.memory_space<vmem>>, vector<8x384xf32>,
    return
  }
}

</mosaic_0001>

<bundles_post_ra>
// kernel: double_conv_forward.1
= control target key start
LH: loop header
LB: loop body
LE: loop exit
PB: predicated region body
PF: predicated region fallthrough
CT: control target
= control target key end

     0   :  { %v933_v1 = vmov 0.0   ;;  %vm49_vm0 = vcmask 797696   ;;  %s934_s20 = smov 112   ;;  %s935_s21 = smov 127   ;;  %vm23_vm1 = vcmask 556032   ;;  %vm40_vm2 = vcmask 551936   ;;  %s1218_s0 = inlined_call_operand.vmem [shape: f32[2,4,256], index: 0, kind: input, shape index: {}]   ;;  %s1219_s2 = inlined_call_operand.vmem [shape: f32[8,1], index: 2, kind: input, shape index: {}]   ;;  %s1220_s1 = inlined_call_operand.vmem [shape: f32[8,36], index: 1, kind: input, shape index: {}]   ;;  %s1221_s4 = inlined_call_operand.vmem [shape: f32[8,1], index: 4, kind: input, shape index: {}]   ;;  %s1222_s3 = inlined_call_operand.vmem [shape: f32[8,72], index: 3, kind: input, shape index: {}]   ;;  %s1223_s5 = inlined_call_operand.vmem [shape: f32[8,384], index: 5, kind: output, shape index: {}]  }
   0x1   :  { %v994_v0 = vld [vmem:[%s1218_s0] sm:$0xff]  ;;  %26 = vst [vmem:[#allocation2 + $0x28] sm:$0xff] %v933_v1  ;;  %20 = vst [vmem:[#allocation2] sm:$0xff] %v933_v1  ;;  %360 = vmatprep.mubr.f32.mxu0 %v933_v1  ;;  %431 = vmatprep.mubr.f32.mxu1 %v933_v1  ;;  %v815_v3 = vld [vmem:[%s1218_s0 + $0x8] sm:$0xff]  ;;  %s936_s24 = smov 98   ;;  %s937_s25 = smov 126  }
   0x2   :  { %21 = vst [vmem:[#allocation2 + $0x8] sm:$0xff] %v933_v1  ;;  %22 = vst [vmem:[#allocation2 + $0x10] sm:$0xff] %v933_v1  ;;  %117 = vrot.lane.b32.xlu1 %v994_v0, %s934_s20  ;;  %69 = vrot.lane.b32.xlu0 %v994_v0, %s935_s21  ;;  %v46_v2 = vcombine.high %v994_v0, %v994_v0  ;;  %v78_v4 = vcombine.low %v815_v3, %v815_v3  ;;  %s938_s0 = smov 97   ;;  %s939_s26 = smov 96   ;;  %v949_v7 = vmov 0   ;;  %v273_v8 = vld [vmem:[%s1219_s2] sm:$0xff] }
   0x3   :  { %25 = vst [vmem:[#allocation2 + $0x20] sm:$0xff] %v933_v1  ;;  %27 = vst [vmem:[#allocation2 + $0x30] sm:$0xff] %v933_v1  ;;  %v66_v5 = vcombine.low %v994_v0, %v994_v0  ;;  %s940_s27 = smov 82   ;;  %v52_v6 = vcombine.high %v815_v3, %v815_v3  ;;  %s941_s28 = smov 110   ;;  %927 = vset.pattern.permute.xlu0 %v949_v7  ;;  %928 = vset.pattern.permute.xlu1 %v949_v7  ;;  %vm76_vm3 = vcmask 801796   ;;  %vm62_vm4 = vcmask 1044240  }
   0x4   :  { %29 = vst [vmem:[#allocation2 + $0x40] sm:$0xff] %v933_v1  ;;  %30 = vst [vmem:[#allocation2 + $0x48] sm:$0xff] %v933_v1  ;;  %s942_s29 = smov 111   ;;  %s943_s30 = smov 95   ;;  %vm88_vm5 = vcmask 1048340   ;;  %vm71_vm6 = vcmask 1039360  }
   0x5   :  { %31 = vst [vmem:[#allocation2 + $0x50] sm:$0xff] %v933_v1  ;;  %33 = vst [vmem:[#allocation2 + $0x60] sm:$0xff] %v933_v1  ;;  %s944_s6 = smov 81   ;;  %s945_s7 = smov 80   ;;  %vm97_vm7 = vcmask 1031168   ;;  %vm119_vm8 = vcmask 916480  }
   0x6   :  { %34 = vst [vmem:[#allocation2 + $0x68] sm:$0xff] %v933_v1  ;;  %35 = vst [vmem:[#allocation2 + $0x70] sm:$0xff] %v933_v1  ;;  %53 = vrot.lane.b32.xlu1 %v815_v3, %s936_s24  ;;  %95 = vrot.lane.b32.xlu0 %v46_v2, %s937_s25  ;;  %s946_s8 = smov 66   ;;  %s947_s9 = smov 65   ;;  %vm83_vm9 = vcmask 793600   ;;  %vm91_vm10 = vcmask 556036  }
   0x7   :  { %37 = vst [vmem:[#allocation2 + $0x80] sm:$0xf] %v933_v1  ;;  %38 = vst [vmem:[#allocation2 + $0x88] sm:$0xf] %v933_v1  ;;  %s948_s10 = smov 94   ;;  %s950_s11 = smov 64  }
   0x8   :  { %39 = vst [vmem:[#allocation2 + $0x90] sm:$0xf] %v933_v1  ;;  %48 = vst [vmem:[#allocation2] sm:$0xf] %v994_v0  ;;  %vm57_vm11 = vcmask 801792   ;;  %vm129_vm12 = vcmask 670720  }
   0x9   :  { %50 = vst.msk [vmem:[#allocation2 + $0x8] sm:$0xf] %vm49_vm0, %v46_v2  ;;  %vm107_vm13 = vcmask 785408   ;;  %vm213_vm14 = vcmask 777220   ;;  %vm189_vm15 = vcmask 781312   ;;  %s952_s15 = smov 92  }
   0xa   :  { %24 = vst.msk [vmem:[#allocation2 + $0x18] sm:$0xff] %vm23_vm1, %v933_v1  ;;  %28 = vst.msk [vmem:[#allocation2 + $0x38] sm:$0xff] %vm23_vm1, %v933_v1  ;;  %79 = vrot.lane.b32.xlu1 %v78_v4, %s938_s0  ;;  %67 = vrot.lane.b32.xlu0 %v66_v5, %s935_s21  ;;  %s953_s16 = smov 78   ;;  %s954_s17 = smov 77  }
   0xb   :  { %32 = vst.msk [vmem:[#allocation2 + $0x58] sm:$0xff] %vm23_vm1, %v933_v1  ;;  %36 = vst.msk [vmem:[#allocation2 + $0x78] sm:$0xff] %vm23_vm1, %v933_v1  ;;  %vm141_vm1 = vcmask 908288   ;;  %s955_s18 = smov 76   ;;  %s956_s19 = smov 62  }
   0xc   :  { %41 = vst.msk [vmem:[#allocation2 + $0x98] sm:$0xf] %vm40_vm2, %v933_v1  ;;  %s958_s22 = smov 61  }
   0xe   :  { %103 = vrot.lane.b32.xlu1 %v815_v3, %s939_s26  ;;  %93 = vrot.lane.b32.xlu0 %v994_v0, %s937_s25 }
  0x12   :  { %125 = vrot.lane.b32.xlu1 %v78_v4, %s940_s27  ;;  %115 = vrot.lane.b32.xlu0 %v66_v5, %s934_s20 }
  0x16   :  { %81 = vrot.lane.b32.xlu1 %v815_v3, %s938_s0  ;;  %55 = vrot.lane.b32.xlu0 %v52_v6, %s936_s24 }
  0x1a   :  { %127 = vrot.lane.b32.xlu1 %v815_v3, %s940_s27  ;;  %105 = vrot.lane.b32.xlu0 %v52_v6, %s939_s26 }
  0x1e   :  { %161 = vrot.lane.b32.xlu1 %v994_v0, %s941_s28  ;;  %139 = vrot.lane.b32.xlu0 %v46_v2, %s942_s29 }
  0x22   :  { %206 = vrot.lane.b32.xlu1 %v994_v0, %s943_s30  ;;  %183 = vrot.lane.b32.xlu0 %v46_v2, %s939_s26 }
  0x26   :  { %147 = vrot.lane.b32.xlu1 %v815_v3, %s944_s6  ;;  %137 = vrot.lane.b32.xlu0 %v994_v0, %s942_s29 }
  0x2a   :  { %169 = vrot.lane.b32.xlu1 %v78_v4, %s945_s7  ;;  %159 = vrot.lane.b32.xlu0 %v66_v5, %s941_s28 }
  0x2e   :  { %191 = vrot.lane.b32.xlu1 %v815_v3, %s946_s8  ;;  %181 = vrot.lane.b32.xlu0 %v994_v0, %s939_s26 }
  0x32   :  { %215 = vrot.lane.b32.xlu1 %v78_v4, %s947_s9  ;;  %204 = vrot.lane.b32.xlu0 %v66_v5, %s943_s30 }
  0x36   :  { %171 = vrot.lane.b32.xlu1 %v815_v3, %s945_s7  ;;  %149 = vrot.lane.b32.xlu0 %v52_v6, %s944_s6 }
  0x3a   :  { %217 = vrot.lane.b32.xlu1 %v815_v3, %s947_s9  ;;  %193 = vrot.lane.b32.xlu0 %v52_v6, %s946_s8 }
  0x3e   :  { %228 = vrot.lane.b32.xlu1 %v994_v0, %s948_s10  ;;  %230 = vrot.lane.b32.xlu0 %v46_v2, %s948_s10 }
  0x42   :  { %241 = vrot.lane.b32.xlu1 %v52_v6, %s950_s11  ;;  %239 = vrot.lane.b32.xlu0 %v815_v3, %s950_s11 }
  0x46   :  { %276 = vperm.xlu0 %927, %v273_v8  }
  0x74   :  { %v118_v9 = vpop.permute.xlu1 %117  ;;  %v70_v10 = vpop.permute.xlu0 %69 }
  0x75   :  { %124 = vst.msk [vmem:[#allocation2 + $0x28] sm:$0xf0] %vm76_vm3, %v118_v9  ;;  %77 = vst.msk [vmem:[#allocation2 + $0x8] sm:$0xf0] %vm76_vm3, %v70_v10 }
  0x78   :  { %v54_v11 = vpop.permute.xlu1 %53  ;;  %v96_v12 = vpop.permute.xlu0 %95 }
  0x79   :  { %63 = vst.msk [vmem:[#allocation2 + $0x8] sm:$0xf] %vm62_vm4, %v54_v11 }
  0x7a   :  { %102 = vst.msk [vmem:[#allocation2 + $0x28] sm:$0xf] %vm49_vm0, %v96_v12 }
  0x7c   :  { %v80_v13 = vpop.permute.xlu1 %79  ;;  %v68_v14 = vpop.permute.xlu0 %67 }
  0x7d   :  { %89 = vst.msk [vmem:[#allocation2 + $0x8] sm:$0xf0] %vm88_vm5, %v80_v13  ;;  %v72_v15 = vsel %vm71_vm6, %v68_v14, %v70_v10 }
  0x7e   :  { %75 = vst [vmem:[#allocation2] sm:$0xf0] %v72_v15 }
  0x80   :  { %v104_v16 = vpop.permute.xlu1 %103  ;;  %v94_v17 = vpop.permute.xlu0 %93 }
  0x81   :  { %112 = vst.msk [vmem:[#allocation2 + $0x28] sm:$0xf] %vm62_vm4, %v104_v16  ;;  %v98_v18 = vsel %vm97_vm7, %v94_v17, %v96_v12 }
  0x82   :  { %101 = vst [vmem:[#allocation2 + $0x20] sm:$0xf] %v98_v18 }
  0x84   :  { %v126_v19 = vpop.permute.xlu1 %125  ;;  %v116_v20 = vpop.permute.xlu0 %115  ;;  %v254_v28 = vld [vmem:[#allocation2 + $0x8] sm:$0xff] }
  0x85   :  { %134 = vst.msk [vmem:[#allocation2 + $0x28] sm:$0xf0] %vm88_vm5, %v126_v19  ;;  %v120_v21 = vsel %vm119_vm8, %v116_v20, %v118_v9  ;;  %v253_v33 = vld [vmem:[#allocation2] sm:$0xff] }
  0x86   :  { %123 = vst [vmem:[#allocation2 + $0x20] sm:$0xf0] %v120_v21 }
  0x88   :  { %v82_v22 = vpop.permute.xlu1 %81  ;;  %v56_v23 = vpop.permute.xlu0 %55 }
  0x89   :  { %v84_v24 = vsel %vm83_vm9, %v80_v13, %v82_v22  ;;  %92 = vst.msk [vmem:[#allocation2 + $0x18] sm:$0xf0] %vm91_vm10, %v82_v22  ;;  %v58_v25 = vsel %vm57_vm11, %v54_v11, %v56_v23  ;;  %vm173_vm9 = vcmask 654336   ;;  %vm151_vm11 = vcmask 662528  }
  0x8a   :  { %65 = vst.msk [vmem:[#allocation2 + $0x18] sm:$0xf] %vm40_vm2, %v56_v23  ;;  %90 = vst [vmem:[#allocation2 + $0x10] sm:$0xf0] %v84_v24  ;;  %v252_v23 = vld [vmem:[%s1220_s1] sm:$0xff]  ;;  %s951_s1 = smov 93  }
  0x8b   :  { %64 = vst [vmem:[#allocation2 + $0x10] sm:$0xf] %v58_v25 }
  0x8c   :  { %v128_v26 = vpop.permute.xlu1 %127  ;;  %v106_v27 = vpop.permute.xlu0 %105  ;;  %v258_v29 = vld [vmem:[#allocation2 + $0x28] sm:$0xff] }
  0x8d   :  { %v130_v30 = vsel %vm129_vm12, %v126_v19, %v128_v26  ;;  %136 = vst.msk [vmem:[#allocation2 + $0x38] sm:$0xf0] %vm91_vm10, %v128_v26  ;;  %v108_v31 = vsel %vm107_vm13, %v104_v16, %v106_v27  ;;  %v855_v32 = vpack.c.bf16 %v258_v29, %v254_v28  ;;  %v257_v34 = vld [vmem:[#allocation2 + $0x20] sm:$0xff]  ;;  %vm219_vm12 = vcmask 531456  }
  0x8e   :  { %114 = vst.msk [vmem:[#allocation2 + $0x38] sm:$0xf] %vm40_vm2, %v106_v27  ;;  %135 = vst [vmem:[#allocation2 + $0x30] sm:$0xf0] %v130_v30  ;;  %v857_v35 = vpack.c.bf16 %v257_v34, %v253_v33 }
  0x8f   :  { %113 = vst [vmem:[#allocation2 + $0x30] sm:$0xf] %v108_v31  ;;  %856 = vmatprep.subr.bf16.mxu0 %v855_v32 }
  0x90   :  { %v162_v36 = vpop.permute.xlu1 %161  ;;  %v140_v37 = vpop.permute.xlu0 %139  ;;  %858 = vmatpush1.bf16.msra.mxu0 %v857_v35 }
  0x91   :  { %168 = vst.msk [vmem:[#allocation2 + $0x48] sm:$0xf0] %vm76_vm3, %v162_v36  ;;  %v256_v40 = vld [vmem:[#allocation2 + $0x18] sm:$0xff]  ;;  %vm208_vm3 = vcmask 777216  }
  0x92   :  { %146 = vst.msk [vmem:[#allocation2 + $0x48] sm:$0xf] %vm49_vm0, %v140_v37  ;;  %v255_v43 = vld [vmem:[#allocation2 + $0x10] sm:$0xff]  ;;  %vm1224_vm0 = vcmask 900096  }
  0x94   :  { %v207_v38 = vpop.permute.xlu1 %206  ;;  %v184_v39 = vpop.permute.xlu0 %183 }
  0x95   :  { %v260_v41 = vld [vmem:[#allocation2 + $0x38] sm:$0xff]  ;;  %214 = vst.msk [vmem:[#allocation2 + $0x68] sm:$0xf0] %vm213_vm14, %v207_v38  ;;  %vm226_vm14 = vcmask 531460  }
  0x96   :  { %190 = vst.msk [vmem:[#allocation2 + $0x68] sm:$0xf] %vm189_vm15, %v184_v39  ;;  %v863_v42 = vpack.c.bf16 %v260_v41, %v256_v40  ;;  %v259_v44 = vld [vmem:[#allocation2 + $0x30] sm:$0xff]  ;;  %vm195_vm15 = vcmask 539648   ;;  %v654_v40 = vld [vmem:[%s1221_s4] sm:$0xff] }
  0x97   :  { %v865_v45 = vpack.c.bf16 %v259_v44, %v255_v43 }
  0x98   :  { %864 = vmatprep.subr.bf16.mxu1 %v863_v42  ;;  %v148_v46 = vpop.permute.xlu1 %147  ;;  %v138_v47 = vpop.permute.xlu0 %137 }
  0x99   :  { %866 = vmatpush1.bf16.msra.mxu1 %v865_v45  ;;  %156 = vst.msk [vmem:[#allocation2 + $0x48] sm:$0xf] %vm62_vm4, %v148_v46  ;;  %v142_v48 = vsel %vm141_vm1, %v138_v47, %v140_v37 }
  0x9a   :  { %145 = vst [vmem:[#allocation2 + $0x40] sm:$0xf] %v142_v48 }
  0x9c   :  { %v170_v49 = vpop.permute.xlu1 %169  ;;  %v160_v50 = vpop.permute.xlu0 %159 }
  0x9d   :  { %178 = vst.msk [vmem:[#allocation2 + $0x48] sm:$0xf0] %vm88_vm5, %v170_v49  ;;  %v164_v51 = vsel %vm1224_vm0, %v160_v50, %v162_v36  ;;  %vm202_vm0 = vcmask 535552  }
  0x9e   :  { %167 = vst [vmem:[#allocation2 + $0x40] sm:$0xf0] %v164_v51 }
  0xa0   :  { %v192_v52 = vpop.permute.xlu1 %191  ;;  %v182_v53 = vpop.permute.xlu0 %181 }
  0xa1   :  { %200 = vst.msk [vmem:[#allocation2 + $0x68] sm:$0xf] %vm62_vm4, %v192_v52  ;;  %v185_v54 = vsel %vm107_vm13, %v182_v53, %v184_v39  ;;  %v957_v39 = vmov 0.0|0.0  }
  0xa2   :  { %188 = vst [vmem:[#allocation2 + $0x60] sm:$0xf] %v185_v54 }
  0xa4   :  { %v216_v55 = vpop.permute.xlu1 %215  ;;  %v205_v56 = vpop.permute.xlu0 %204  ;;  %v262_v0 = vld [vmem:[#allocation2 + $0x48] sm:$0xff] }
  0xa5   :  { %224 = vst.msk [vmem:[#allocation2 + $0x68] sm:$0xf0] %vm88_vm5, %v216_v55  ;;  %v209_v57 = vsel %vm208_vm3, %v205_v56, %v207_v38  ;;  %v261_v6 = vld [vmem:[#allocation2 + $0x40] sm:$0xff]  ;;  %vm237_vm5 = vcmask 764928  }
  0xa6   :  { %212 = vst [vmem:[#allocation2 + $0x60] sm:$0xf0] %v209_v57 }
  0xa8   :  { %v172_v58 = vpop.permute.xlu1 %171  ;;  %v150_v59 = vpop.permute.xlu0 %149 }
  0xa9   :  { %v174_v60 = vsel %vm173_vm9, %v170_v49, %v172_v58  ;;  %180 = vst.msk [vmem:[#allocation2 + $0x58] sm:$0xf0] %vm91_vm10, %v172_v58  ;;  %v152_v61 = vsel %vm151_vm11, %v148_v46, %v150_v59  ;;  %vm250_vm10 = vcmask 519168   ;;  %vm243_vm9 = vcmask 523264  }
  0xaa   :  { %158 = vst.msk [vmem:[#allocation2 + $0x58] sm:$0xf] %vm40_vm2, %v150_v59  ;;  %179 = vst [vmem:[#allocation2 + $0x50] sm:$0xf0] %v174_v60  ;;  %vm232_vm2 = vcmask 769024   ;;  %vm279_vm11 = vcmask 293888  }
  0xab   :  { %157 = vst [vmem:[#allocation2 + $0x50] sm:$0xf] %v152_v61 }
  0xac   :  { %v218_v62 = vpop.permute.xlu1 %217  ;;  %v194_v63 = vpop.permute.xlu0 %193  ;;  %v266_v2 = vld [vmem:[#allocation2 + $0x68] sm:$0xff] }
  0xad   :  { %v220_v3 = vsel %vm219_vm12, %v216_v55, %v218_v62  ;;  %227 = vst.msk [vmem:[#allocation2 + $0x78] sm:$0xf0] %vm226_vm14, %v218_v62  ;;  %v196_v4 = vsel %vm195_vm15, %v192_v52, %v194_v63  ;;  %v859_v5 = vpack.c.bf16 %v266_v2, %v262_v0  ;;  %v265_v7 = vld [vmem:[#allocation2 + $0x60] sm:$0xff]  ;;  %vm498_vm12 = vcmask 752640  }
  0xae   :  { %203 = vst.msk [vmem:[#allocation2 + $0x78] sm:$0xf] %vm202_vm0, %v194_v63  ;;  %225 = vst [vmem:[#allocation2 + $0x70] sm:$0xf0] %v220_v3  ;;  %v861_v8 = vpack.c.bf16 %v265_v7, %v261_v6  ;;  %vm283_vm0 = vcmask 1043456   ;;  %vm476_vm14 = vcmask 760832  }
  0xaf   :  { %201 = vst [vmem:[#allocation2 + $0x70] sm:$0xf] %v196_v4  ;;  %860 = vmatprep.subr.bf16.mxu0 %v859_v5  ;;  %vm542_vm15 = vcmask 629760  }
  0xb0   :  { %v229_v9 = vpop.permute.xlu1 %228  ;;  %v231_v10 = vpop.permute.xlu0 %230  ;;  %862 = vmatpush1.bf16.msra.mxu0 %v861_v8 }
  0xb1   :  { %v233_v11 = vsel %vm232_vm2, %v229_v9, %v231_v10  ;;  %238 = vst.msk [vmem:[#allocation2 + $0x88] sm:$0xf] %vm237_vm5, %v231_v10  ;;  %v264_v14 = vld [vmem:[#allocation2 + $0x58] sm:$0xff]  ;;  %vm520_vm5 = vcmask 637952  }
  0xb2   :  { %236 = vst [vmem:[#allocation2 + $0x80] sm:$0xf] %v233_v11  ;;  %v263_v18 = vld [vmem:[#allocation2 + $0x50] sm:$0xff] }
  0xb4   :  { %v242_v12 = vpop.permute.xlu1 %241  ;;  %v240_v13 = vpop.permute.xlu0 %239 }
  0xb5   :  { %v268_v15 = vld [vmem:[#allocation2 + $0x78] sm:$0xff]  ;;  %251 = vst.msk [vmem:[#allocation2 + $0x98] sm:$0xf] %vm250_vm10, %v242_v12  ;;  %v244_v16 = vsel %vm243_vm9, %v240_v13, %v242_v12  ;;  %vm584_vm10 = vcmask 506880  }
  0xb6   :  { %248 = vst.msk [vmem:[#allocation2 + $0x88] sm:$0xf] %vm62_vm4, %v240_v13  ;;  %v867_v17 = vpack.c.bf16 %v268_v15, %v264_v14  ;;  %v267_v19 = vld [vmem:[#allocation2 + $0x70] sm:$0xff]  ;;  %249 = vst [vmem:[#allocation2 + $0x90] sm:$0xf] %v244_v16  ;;  %vm960_vm4 = vmmov 0  }
  0xb7   :  { %v869_v20 = vpack.c.bf16 %v267_v19, %v263_v18 }
  0xb8   :  { %868 = vmatprep.subr.bf16.mxu1 %v867_v17 }
  0xb9   :  { %870 = vmatpush1.bf16.msra.mxu1 %v869_v20  ;;  %v269_v24 = vld [vmem:[#allocation2 + $0x80] sm:$0xf] }
  0xbc   :  { %v272_v22 = vld [vmem:[#allocation2 + $0x98] sm:$0xf] }
  0xbd   :  { %v270_v21 = vld [vmem:[#allocation2 + $0x88] sm:$0xf]  ;;  %819 = vmatprep.subr.msk.mxu1 %vm283_vm0, %v272_v22  ;;  %v271_v25 = vld [vmem:[#allocation2 + $0x90] sm:$0xf] }
  0xbe   :  { %816 = vmatprep.subr.msk.mxu0 %vm283_vm0, %v270_v21  ;;  %820 = vmatpush1.msk.msra.mxu1 %vm283_vm0, %v271_v25 }
  0xbf   :  { %817 = vmatpush1.msk.msra.mxu0 %vm283_vm0, %v269_v24  ;;  %821 = vmatmul.mubr.msk.f32.vlgmr.msra.gmra.mrb[0].mxu1 %vm279_vm11, %v252_v23  ;;  %vm564_vm0 = vcmask 621568  }
  0xc0   :  { %818 = vmatmul.mubr.msk.f32.vlgmr.msra.gmra.mrb[0].mxu0 %vm279_vm11, %v252_v23  ;;  %887 = vmatprep.subr.bf16.mxu1 %v957_v39  ;;  %vm457_vm11 = vcmask 1048064  }
  0xc1   :  { %728 = vmatprep.mubr.f32.mxu0 %v933_v1  ;;  %852 = vmatprep.mubr.msk.f32.mxu1 %vm960_vm4, %v933_v1 }
  0xc5   :  { %v277_v26 = vpop.permute.xlu0 %276 }
 0x192   :  { %v433_v27 = vpop.f32.mrb[0].mxu1 }
 0x193   :  { %v362_v28 = vpop.f32.mrb[0].mxu0  ;;  %v434_v29 = vadd.f32 %v433_v27, %v277_v26  ;;  %v435_v32 = vpop.f32.mrb[1].mxu1 }
 0x194   :  { %v363_v30 = vadd.f32 %v362_v28, %v277_v26  ;;  %v364_v31 = vpop.f32.mrb[1].mxu0  ;;  %v436_v37 = vadd.f32 %v435_v32, %v277_v26 }
 0x195   :  { %v365_v33 = vadd.f32 %v364_v31, %v277_v26  ;;  %v440_v34 = vmax.f32 %v434_v29, 0.0 }
 0x196   :  { %v1091_v35 = vmax.f32 %v363_v30, 0.0  ;;  %v441_v38 = vmax.f32 %v436_v37, 0.0 }
 0x197   :  { %v439_v36 = vmax.f32 %v365_v33, 0.0  ;;  %472 = vrot.lane.b32.xlu0 %v440_v34, %s951_s1  ;;  %449 = vrot.lane.b32.xlu1 %v440_v34, %s948_s10 }
 0x199   :  { %443 = vst.msk [vmem:[#allocation3 + $0x8] sm:$0xff] %vm243_vm9, %v439_v36 }
 0x19b   :  { %494 = vrot.lane.b32.xlu0 %v440_v34, %s952_s15  ;;  %516 = vrot.lane.b32.xlu1 %v440_v34, %s953_s16 }
 0x19f   :  { %538 = vrot.lane.b32.xlu0 %v440_v34, %s954_s17  ;;  %560 = vrot.lane.b32.xlu1 %v440_v34, %s955_s18 }
 0x1a3   :  { %451 = vrot.lane.b32.xlu0 %v441_v38, %s948_s10  ;;  %580 = vrot.lane.b32.xlu1 %v440_v34, %s956_s19 }
 0x1a7   :  { %599 = vrot.lane.b32.xlu1 %v440_v34, %s958_s22  ;;  %483 = vrot.lane.b32.xlu0 %v1091_v35, %s937_s25 }
 0x1ab   :  { %496 = vrot.lane.b32.xlu0 %v441_v38, %s952_s15  ;;  %461 = vrot.lane.b32.xlu1 %v1091_v35, %s935_s21 }
 0x1af   :  { %527 = vrot.lane.b32.xlu0 %v1091_v35, %s942_s29  ;;  %474 = vrot.lane.b32.xlu1 %v441_v38, %s951_s1 }
 0x1b3   :  { %540 = vrot.lane.b32.xlu0 %v441_v38, %s954_s17  ;;  %505 = vrot.lane.b32.xlu1 %v1091_v35, %s934_s20 }
 0x1b7   :  { %571 = vrot.lane.b32.xlu0 %v1091_v35, %s939_s26  ;;  %518 = vrot.lane.b32.xlu1 %v441_v38, %s953_s16 }
 0x1bb   :  { %590 = vrot.lane.b32.xlu0 %v1091_v35, %s943_s30  ;;  %549 = vrot.lane.b32.xlu1 %v1091_v35, %s941_s28 }
 0x1bf   :  { %582 = vrot.lane.b32.xlu0 %v441_v38, %s956_s19  ;;  %562 = vrot.lane.b32.xlu1 %v441_v38, %s955_s18 }
 0x1c3   :  { %463 = vrot.lane.b32.xlu0 %v439_v36, %s935_s21  ;;  %447 = vrot.lane.b32.xlu1 %v439_v36, %s948_s10  ;;  %s959_s21 = smov 60  }
 0x1c7   :  { %485 = vrot.lane.b32.xlu0 %v439_v36, %s937_s25  ;;  %470 = vrot.lane.b32.xlu1 %v439_v36, %s951_s1 }
 0x1cb   :  { %514 = vrot.lane.b32.xlu0 %v439_v36, %s953_s16  ;;  %492 = vrot.lane.b32.xlu1 %v439_v36, %s952_s15 }
 0x1cf   :  { %529 = vrot.lane.b32.xlu0 %v439_v36, %s942_s29  ;;  %507 = vrot.lane.b32.xlu1 %v439_v36, %s934_s20 }
 0x1d3   :  { %558 = vrot.lane.b32.xlu0 %v439_v36, %s955_s18  ;;  %536 = vrot.lane.b32.xlu1 %v439_v36, %s954_s17 }
 0x1d7   :  { %573 = vrot.lane.b32.xlu0 %v439_v36, %s939_s26  ;;  %551 = vrot.lane.b32.xlu1 %v439_v36, %s941_s28 }
 0x1db   :  { %609 = vrot.lane.b32.xlu0 %v1091_v35, %s948_s10  ;;  %592 = vrot.lane.b32.xlu1 %v439_v36, %s943_s30 }
 0x1df   :  { %618 = vrot.lane.b32.xlu0 %v441_v38, %s959_s21  ;;  %601 = vrot.lane.b32.xlu1 %v441_v38, %s958_s22 }
 0x1e3   :  { %616 = vrot.lane.b32.xlu1 %v440_v34, %s959_s21 }
 0x1e7   :  { %657 = vperm.xlu1 %928, %v654_v40  }
 0x209   :  { %v473_v41 = vpop.permute.xlu0 %472  ;;  %v450_v42 = vpop.permute.xlu1 %449 }
 0x20d   :  { %v495_v43 = vpop.permute.xlu0 %494  ;;  %v517_v44 = vpop.permute.xlu1 %516 }
 0x211   :  { %v1142_v45 = vpop.permute.xlu0 %538  ;;  %v1144_v46 = vpop.permute.xlu1 %560 }
 0x215   :  { %v452_v47 = vpop.permute.xlu0 %451  ;;  %v1146_v48 = vpop.permute.xlu1 %580 }
 0x216   :  { %v454_v49 = vsel %vm232_vm2, %v450_v42, %v452_v47 }
 0x219   :  { %v1149_v50 = vpop.permute.xlu1 %599  ;;  %v484_v51 = vpop.permute.xlu0 %483 }
 0x21d   :  { %v497_v52 = vpop.permute.xlu0 %496  ;;  %v462_v53 = vpop.permute.xlu1 %461 }
 0x21e   :  { %v500_v54 = vsel %vm498_vm12, %v495_v43, %v497_v52 }
 0x221   :  { %v528_v55 = vpop.permute.xlu0 %527  ;;  %v475_v56 = vpop.permute.xlu1 %474 }
 0x222   :  { %v478_v57 = vsel %vm476_vm14, %v473_v41, %v475_v56 }
 0x223   :  { %v888_v58 = vpack.c.bf16 %v478_v57, %v454_v49 }
 0x225   :  { %v541_v59 = vpop.permute.xlu0 %540  ;;  %v506_v60 = vpop.permute.xlu1 %505  ;;  %889 = vmatpush3.bf16.msra.mxu1 %v888_v58 }
 0x226   :  { %v544_v61 = vsel %vm542_vm15, %v1142_v45, %v541_v59  ;;  %890 = vmatprep.subr.bf16.mxu1 %v957_v39  ;;  %v626_v59 = vld [vmem:[%s1222_s3] sm:$0xff] }
 0x229   :  { %v572_v62 = vpop.permute.xlu0 %571  ;;  %v519_v63 = vpop.permute.xlu1 %518 }
 0x22a   :  { %v522_v0 = vsel %vm520_vm5, %v517_v44, %v519_v63 }
 0x22b   :  { %v891_v2 = vpack.c.bf16 %v522_v0, %v500_v54 }
 0x22d   :  { %v1157_v3 = vpop.permute.xlu0 %590  ;;  %v550_v4 = vpop.permute.xlu1 %549  ;;  %892 = vmatpush3.bf16.msra.mxu1 %v891_v2 }
 0x22e   :  { %893 = vmatprep.subr.bf16.mxu1 %v957_v39 }
 0x231   :  { %v583_v5 = vpop.permute.xlu0 %582  ;;  %v563_v6 = vpop.permute.xlu1 %562 }
 0x232   :  { %v1161_v7 = vsel %vm584_vm10, %v1146_v48, %v583_v5  ;;  %v566_v8 = vsel %vm564_vm0, %v1144_v46, %v563_v6 }
 0x233   :  { %v894_v9 = vpack.c.bf16 %v566_v8, %v544_v61 }
 0x235   :  { %v464_v10 = vpop.permute.xlu0 %463  ;;  %v448_v11 = vpop.permute.xlu1 %447  ;;  %895 = vmatpush3.bf16.msra.mxu1 %v894_v9 }
 0x236   :  { %v465_v12 = vsel %vm71_vm6, %v462_v53, %v464_v10  ;;  %469 = vst.msk [vmem:[#allocation3 + $0x20] sm:$0xff] %vm243_vm9, %v464_v10  ;;  %v453_v13 = vsel %vm232_vm2, %v448_v11, %v450_v42  ;;  %615 = vst.msk [vmem:[#allocation3 + $0xc8] sm:$0xff] %vm243_vm9, %v448_v11  ;;  %896 = vmatprep.subr.bf16.mxu1 %v957_v39  ;;  %vm1225_vm6 = vcmask 900096  }
 0x237   :  { %458 = vst.msk [vmem:[#allocation3 + $0x8] sm:$0xff] %vm457_vm11, %v453_v13  ;;  %v873_v29 = vpack.c.bf16 %v465_v12, %v1091_v35 }
 0x239   :  { %v486_v14 = vpop.permute.xlu0 %485  ;;  %v471_v15 = vpop.permute.xlu1 %470 }
 0x23a   :  { %v487_v16 = vsel %vm97_vm7, %v484_v51, %v486_v14  ;;  %491 = vst.msk [vmem:[#allocation3 + $0x38] sm:$0xff] %vm243_vm9, %v486_v14  ;;  %v477_v17 = vsel %vm476_vm14, %v471_v15, %v473_v41  ;;  %vm603_vm7 = vcmask 498688  }
 0x23b   :  { %481 = vst.msk [vmem:[#allocation3 + $0x20] sm:$0xff] %vm457_vm11, %v477_v17 }
 0x23d   :  { %v515_v18 = vpop.permute.xlu0 %514  ;;  %v493_v19 = vpop.permute.xlu1 %492 }
 0x23e   :  { %v499_v20 = vsel %vm498_vm12, %v493_v19, %v495_v43  ;;  %v521_v23 = vsel %vm520_vm5, %v515_v18, %v517_v44  ;;  %v628_v26 = vld [vmem:[#allocation3 + $0x8] sm:$0xff] }
 0x23f   :  { %503 = vst.msk [vmem:[#allocation3 + $0x38] sm:$0xff] %vm457_vm11, %v499_v20 }
 0x241   :  { %v530_v21 = vpop.permute.xlu0 %529  ;;  %v508_v22 = vpop.permute.xlu1 %507 }
 0x242   :  { %v531_v24 = vsel %vm141_vm1, %v528_v55, %v530_v21  ;;  %535 = vst.msk [vmem:[#allocation3 + $0x68] sm:$0xff] %vm243_vm9, %v530_v21  ;;  %v509_v25 = vsel %vm119_vm8, %v506_v60, %v508_v22  ;;  %513 = vst.msk [vmem:[#allocation3 + $0x50] sm:$0xff] %vm243_vm9, %v508_v22  ;;  %v631_v27 = vld [vmem:[#allocation3 + $0x20] sm:$0xff]  ;;  %vm620_vm8 = vcmask 490496  }
 0x243   :  { %525 = vst.msk [vmem:[#allocation3 + $0x50] sm:$0xff] %vm457_vm11, %v521_v23  ;;  %v871_v28 = vpack.c.bf16 %v631_v27, %v628_v26  ;;  %v877_v41 = vpack.c.bf16 %v509_v25, %v487_v16 }
 0x245   :  { %v559_v30 = vpop.permute.xlu0 %558  ;;  %872 = vmatprep.subr.bf16.mxu0 %v871_v28  ;;  %v537_v31 = vpop.permute.xlu1 %536 }
 0x246   :  { %v543_v32 = vsel %vm542_vm15, %v537_v31, %v1142_v45  ;;  %874 = vmatpush1.bf16.msra.mxu0 %v873_v29  ;;  %v565_v36 = vsel %vm564_vm0, %v559_v30, %v1144_v46  ;;  %v634_v38 = vld [vmem:[#allocation3 + $0x38] sm:$0xff] }
 0x247   :  { %547 = vst.msk [vmem:[#allocation3 + $0x68] sm:$0xff] %vm457_vm11, %v543_v32 }
 0x249   :  { %v574_v33 = vpop.permute.xlu0 %573  ;;  %v552_v34 = vpop.permute.xlu1 %551 }
 0x24a   :  { %v575_v37 = vsel %vm107_vm13, %v572_v62, %v574_v33  ;;  %579 = vst.msk [vmem:[#allocation3 + $0x98] sm:$0xff] %vm243_vm9, %v574_v33  ;;  %v553_v35 = vsel %vm1225_vm6, %v550_v4, %v552_v34  ;;  %557 = vst.msk [vmem:[#allocation3 + $0x80] sm:$0xff] %vm243_vm9, %v552_v34  ;;  %v637_v39 = vld [vmem:[#allocation3 + $0x50] sm:$0xff]  ;;  %vm660_vm13 = vcmask 588800  }
 0x24b   :  { %588 = vst.msk [vmem:[#allocation3 + $0x98] sm:$0xff] %vm457_vm11, %v1146_v48  ;;  %569 = vst.msk [vmem:[#allocation3 + $0x80] sm:$0xff] %vm457_vm11, %v565_v36  ;;  %v875_v40 = vpack.c.bf16 %v637_v39, %v634_v38  ;;  %v881_v53 = vpack.c.bf16 %v553_v35, %v531_v24 }
 0x24d   :  { %v610_v42 = vpop.permute.xlu0 %609  ;;  %v593_v43 = vpop.permute.xlu1 %592  ;;  %876 = vmatprep.subr.bf16.mxu0 %v875_v40 }
 0x24e   :  { %v611_v44 = vsel %vm232_vm2, %v610_v42, %v448_v11  ;;  %v594_v45 = vsel %vm208_vm3, %v1157_v3, %v593_v43  ;;  %598 = vst.msk [vmem:[#allocation3 + $0xb0] sm:$0xff] %vm243_vm9, %v593_v43  ;;  %878 = vmatpush1.bf16.msra.mxu0 %v877_v41  ;;  %v640_v48 = vld [vmem:[#allocation3 + $0x68] sm:$0xff] }
 0x24f   :  { %607 = vst.msk [vmem:[#allocation3 + $0xb0] sm:$0xff] %vm457_vm11, %v1149_v50  ;;  %v885_v60 = vpack.c.bf16 %v594_v45, %v575_v37 }
 0x251   :  { %v602_v46 = vpop.permute.xlu1 %601  ;;  %v619_v54 = vpop.permute.xlu0 %618 }
 0x252   :  { %v604_v47 = vsel %vm603_vm7, %v1149_v50, %v602_v46  ;;  %v643_v49 = vld [vmem:[#allocation3 + $0x80] sm:$0xff]  ;;  %v646_v57 = vld [vmem:[#allocation3 + $0x98] sm:$0xff] }
 0x253   :  { %v879_v51 = vpack.c.bf16 %v643_v49, %v640_v48  ;;  %v897_v52 = vpack.c.bf16 %v604_v47, %v1161_v7 }
 0x255   :  { %v617_v55 = vpop.permute.xlu1 %616  ;;  %880 = vmatprep.subr.bf16.mxu0 %v879_v51  ;;  %898 = vmatpush3.bf16.msra.mxu1 %v897_v52 }
 0x256   :  { %v621_v56 = vsel %vm620_vm8, %v617_v55, %v619_v54  ;;  %624 = vst.msk [vmem:[#allocation3 + $0xc8] sm:$0xff] %vm457_vm11, %v617_v55  ;;  %882 = vmatpush1.bf16.msra.mxu0 %v881_v53  ;;  %v649_v58 = vld [vmem:[#allocation3 + $0xb0] sm:$0xff]  ;;  %850 = vmatprep.subr.mxu1 %v933_v1 }
 0x257   :  { %v883_v50 = vpack.c.bf16 %v649_v58, %v646_v57 }
 0x259   :  { %884 = vmatprep.subr.bf16.mxu0 %v883_v50  ;;  %851 = vmatpush3.msra.mxu1 %v621_v56 }
 0x25a   :  { %886 = vmatpush1.bf16.msra.mxu0 %v885_v60  ;;  %853 = vmatmul.mubr.msk.f32.vlgmr.msra.gmra.mrb[2].mxu1 %vm660_vm13, %v626_v59 }
 0x25d   :  { %v652_v61 = vld [vmem:[#allocation3 + $0xc8] sm:$0xff] }
 0x25e   :  { %680 = vmatprep.subr.mxu0 %v652_v61 }
 0x25f   :  { %681 = vmatpush1.msra.mxu0 %v611_v44 }
 0x260   :  { %822 = vmatmul.mubr.msk.f32.vlgmr.msra.gmra.mrb[2].mxu0 %vm660_vm13, %v626_v59 }
 0x266   :  { %v658_v62 = vpop.permute.xlu1 %657 }
 0x32d   :  { %v801_v63 = vpop.f32.mrb[2].mxu1 }
 0x32e   :  { %v802_v0 = vadd.f32 %v801_v63, %v658_v62  ;;  %v854_v2 = vpop.f32.mrb[3].mxu1 }
 0x330   :  { %v807_v1 = vmax.f32 %v802_v0, 0.0 }
 0x332   :  { %810 = vst [vmem:[%s1223_s5 + $0x10] sm:$0xff] %v807_v1 }
 0x333   :  { %v730_v3 = vpop.f32.mrb[2].mxu0 }
 0x334   :  { %v731_v4 = vadd.f32 %v730_v3, %v658_v62  ;;  %v732_v5 = vpop.f32.mrb[3].mxu0 }
 0x335   :  { %v733_v6 = vadd.f32 %v732_v5, %v658_v62 }
 0x336   :  { %v805_v7 = vmax.f32 %v731_v4, 0.0 }
 0x337   :  { %v806_v8 = vmax.f32 %v733_v6, 0.0 }
 0x338   :  { %808 = vst [vmem:[%s1223_s5] sm:$0xff] %v805_v7 }
 0x339   :  { %809 = vst [vmem:[%s1223_s5 + $0x8] sm:$0xff] %v806_v8 }

</bundles_post_ra>
